<compile_context>
chip_gen: v7x
topology: tpu7x:2x2x1
jax: 0.10.0
libtpu: 0.0.40
codegen_flags: <defaults>
</compile_context>

<pallas_src>
import jax
import jax.numpy as jnp
from jax.experimental import pallas as pl
from jax.experimental.pallas import tpu as pltpu

H_S1, H = 256, 64          # hidden sizes: state branch first layer, everything else
BN_EPS = 1e-5


def critic_kernel(s_ref, a_ref,
                  ws1_ref, bs1_ref, ws2_ref, bs2_ref,
                  wa1_ref, ba1_ref, wa2_ref, ba2_ref,
                  wc1s_ref, wc1a_ref, bc1_ref,
                  wc2_ref, bc2_ref, wc3t_ref, bc3_ref,
                  out_ref):
    cdt = ws1_ref.dtype  # MXU input dtype (bf16); accumulation is always f32.

    def dense_relu(x, w_ref, b_ref):
        y = jnp.dot(x.astype(cdt), w_ref[...], preferred_element_type=jnp.float32)
        return jnp.maximum(y + b_ref[...], 0.0)

    # State branch.
    xs = dense_relu(s_ref[...], ws1_ref, bs1_ref)        # (TB, 256)
    xs = dense_relu(xs, ws2_ref, bs2_ref)                # (TB, 64)

    # Fused action branches: block-diagonal weights keep [xa1 | xa2] as one
    # 128-lane-dense tile (no cross-lane shuffles, half the matmuls/bias/relu work).
    xa = dense_relu(a_ref[...], wa1_ref, ba1_ref)        # (TB, 128)
    xa = dense_relu(xa, wa2_ref, ba2_ref)                # (TB, 128)

    # cfc1 on the (virtual) 192-wide concat, with eval-mode BatchNorm folded into
    # the weights/bias host-side.
    # TODO(synk): training-mode BatchNorm (batch statistics + running-stat update)
    # would need a cross-tile reduction over the whole batch; not implemented.
    h = (jnp.dot(xs.astype(cdt), wc1s_ref[...], preferred_element_type=jnp.float32)
         + jnp.dot(xa.astype(cdt), wc1a_ref[...], preferred_element_type=jnp.float32))
    h = jnp.maximum(h + bc1_ref[...], 0.0)               # (TB, 64)
    h = dense_relu(h, wc2_ref, bc2_ref)                  # (TB, 64)

    # Dropout(p=0.2) is identity in eval mode.
    # TODO(synk): training-mode dropout masking (pltpu.prng_*) not implemented.
    # cfc3 (64 -> 1): contract both last dims (trans_b matmul) so the result is a
    # lane-dense (1, TB) row instead of a (TB, 1) column of masked stores.
    q = jax.lax.dot_general(wc3t_ref[...], h.astype(cdt),
                            dimension_numbers=(((1,), (1,)), ((), ())),
                            preferred_element_type=jnp.float32)   # (1, TB)
    out_ref[...] = (q + bc3_ref[...]).astype(out_ref.dtype)


def pack_params(params):
    """Host-side weight packing (all folds done in f32, then cast to the weight dtype):
       - block-diagonal fusion of the two action branches,
       - eval-mode BatchNorm folded into cfc1,
       - cfc3 weight stored transposed (1, 64) for the lane-dense output matmul."""
    f32 = jnp.float32
    wdt = params["Ws1"].dtype
    na1 = params["Wa11"].shape[0]
    na2 = params["Wa21"].shape[0]

    # Action layer 1: (na1+na2, 128) block-diagonal.
    wa1 = jnp.zeros((na1 + na2, 2 * H), f32)
    wa1 = wa1.at[:na1, :H].set(params["Wa11"].astype(f32))
    wa1 = wa1.at[na1:, H:].set(params["Wa21"].astype(f32))
    ba1 = jnp.concatenate([params["ba11"], params["ba21"]], axis=1)      # (1, 128) f32

    # Action layer 2: (128, 128) block-diagonal.
    wa2 = jnp.zeros((2 * H, 2 * H), f32)
    wa2 = wa2.at[:H, :H].set(params["Wa12"].astype(f32))
    wa2 = wa2.at[H:, H:].set(params["Wa22"].astype(f32))
    ba2 = jnp.concatenate([params["ba12"], params["ba22"]], axis=1)      # (1, 128) f32

    # Fold eval-mode BatchNorm1d(192) into cfc1: (xc*scale + shift) @ Wc1 + bc1
    #   == xc @ (diag(scale) @ Wc1) + (bc1 + shift @ Wc1).
    scale = params["bn_gamma"] * jax.lax.rsqrt(params["bn_var"] + BN_EPS)  # (1, 192)
    shift = params["bn_beta"] - params["bn_mean"] * scale                  # (1, 192)
    wc1 = params["Wc1"].astype(f32) * scale.reshape(3 * H, 1)              # (192, 64)
    bc1 = params["bc1"] + shift @ params["Wc1"].astype(f32)                # (1, 64) f32

    return dict(
        Ws1=params["Ws1"], bs1=params["bs1"],
        Ws2=params["Ws2"], bs2=params["bs2"],
        Wa1=wa1.astype(wdt), ba1=ba1,
        Wa2=wa2.astype(wdt), ba2=ba2,
        Wc1s=wc1[:H].astype(wdt), Wc1a=wc1[H:].astype(wdt), bc1=bc1,
        Wc2=params["Wc2"], bc2=params["bc2"],
        Wc3t=params["Wc3"].astype(f32).T.astype(wdt),                      # (1, 64)
        bc3=params["bc3"],
    )


def _round_up(x, m):
    return ((x + m - 1) // m) * m


def centralized_critic_forward(state, action1, action2, params, *, block_batch=1024):
    """state: (B, num_states); action1/2: (B, num_act{1,2}); returns (B, 1) f32."""
    B, num_states = state.shape
    na_tot = action1.shape[1] + action2.shape[1]

    packed = pack_params(params)

    # Fuse the two action inputs host-side (one input DMA stream instead of two).
    a12 = jnp.concatenate([action1, action2], axis=1)                      # (B, na_tot)

    # Batch tiling.
    if B <= block_batch:
        TB, n_blocks = B, 1
    else:
        n_blocks = pl.cdiv(B, block_batch)
        n_blocks += n_blocks % 2            # even tile count -> both v7x TCs get work
        TB = _round_up(pl.cdiv(B, n_blocks), 128)   # 128-aligned lane-dense output tiles
        n_blocks = pl.cdiv(B, TB)
    Bp = n_blocks * TB
    if Bp != B:
        pad = ((0, Bp - B), (0, 0))
        state = jnp.pad(state, pad)
        a12 = jnp.pad(a12, pad)

    def full(x):  # weights/biases: whole array, VMEM-resident across grid steps
        return pl.BlockSpec(x.shape, lambda i: (0, 0))

    def rows(feat):  # batch-tiled inputs
        return pl.BlockSpec((TB, feat), lambda i: (i, 0))

    weights = [
        packed["Ws1"], packed["bs1"], packed["Ws2"], packed["bs2"],
        packed["Wa1"], packed["ba1"], packed["Wa2"], packed["ba2"],
        packed["Wc1s"], packed["Wc1a"], packed["bc1"],
        packed["Wc2"], packed["bc2"], packed["Wc3t"], packed["bc3"],
    ]

    out = pl.pallas_call(
        critic_kernel,
        out_shape=jax.ShapeDtypeStruct((1, Bp), jnp.float32),
        grid=(n_blocks,),
        in_specs=[rows(num_states), rows(na_tot)] + [full(w) for w in weights],
        out_specs=pl.BlockSpec((1, TB), lambda i: (0, i)),
        compiler_params=pltpu.CompilerParams(
            dimension_semantics=("parallel",),   # megacore batch split on v7x
        ),
    )(state, a12, *weights)
    return out[0, :B].reshape(B, 1)


def init_params(key, num_states, num_act1, num_act2, *, weight_dtype=jnp.bfloat16):
    """PyTorch nn.Linear default init (U(-1/sqrt(fan_in), 1/sqrt(fan_in))),
    weights stored transposed as (in, out); BatchNorm1d(192) running stats."""
    def linear(k, fan_in, fan_out):
        kw, kb = jax.random.split(k)
        lim = 1.0 / float(fan_in) ** 0.5
        w = jax.random.uniform(kw, (fan_in, fan_out), jnp.float32, -lim, lim)
        b = jax.random.uniform(kb, (1, fan_out), jnp.float32, -lim, lim)
        return w.astype(weight_dtype), b

    keys = jax.random.split(key, 13)
    p = {}
    p["Ws1"], p["bs1"] = linear(keys[0], num_states, H_S1)
    p["Ws2"], p["bs2"] = linear(keys[1], H_S1, H)
    p["Wa11"], p["ba11"] = linear(keys[2], num_act1, H)
    p["Wa12"], p["ba12"] = linear(keys[3], H, H)
    p["Wa21"], p["ba21"] = linear(keys[4], num_act2, H)
    p["Wa22"], p["ba22"] = linear(keys[5], H, H)
    p["Wc1"], p["bc1"] = linear(keys[6], 3 * H, H)
    p["Wc2"], p["bc2"] = linear(keys[7], H, H)
    p["Wc3"], p["bc3"] = linear(keys[8], H, 1)
    # Mildly non-trivial BatchNorm affine / running stats so the BN fold is exercised.
    p["bn_gamma"] = 1.0 + 0.2 * jax.random.uniform(keys[9], (1, 3 * H), jnp.float32, -1.0, 1.0)
    p["bn_beta"] = 0.1 * jax.random.normal(keys[10], (1, 3 * H), jnp.float32)
    p["bn_mean"] = 0.1 * jax.random.normal(keys[11], (1, 3 * H), jnp.float32)
    p["bn_var"] = 1.0 + 0.2 * jax.random.uniform(keys[12], (1, 3 * H), jnp.float32)
    return p


def critic_reference(state, action1, action2, params):
    """Pure-JAX reference with the original (unpacked) parameters: true eval-mode
    semantics (unfolded BatchNorm, identity dropout), bf16 weights, f32 accumulation."""
    cdt = params["Ws1"].dtype

    def dense_relu(x, w, b):
        y = jnp.dot(x.astype(cdt), w, preferred_element_type=jnp.float32) + b
        return jnp.maximum(y, 0.0)

    xs = dense_relu(state, params["Ws1"], params["bs1"])
    xs = dense_relu(xs, params["Ws2"], params["bs2"])
    xa1 = dense_relu(action1, params["Wa11"], params["ba11"])
    xa1 = dense_relu(xa1, params["Wa12"], params["ba12"])
    xa2 = dense_relu(action2, params["Wa21"], params["ba21"])
    xa2 = dense_relu(xa2, params["Wa22"], params["ba22"])
    xc = jnp.concatenate([xs, xa1, xa2], axis=1)
    scale = params["bn_gamma"] * jax.lax.rsqrt(params["bn_var"] + BN_EPS)
    shift = params["bn_beta"] - params["bn_mean"] * scale
    xc = xc * scale + shift
    h = dense_relu(xc, params["Wc1"], params["bc1"])
    h = dense_relu(h, params["Wc2"], params["bc2"])
    return jnp.dot(h.astype(cdt), params["Wc3"],
                   preferred_element_type=jnp.float32) + params["bc3"]


if __name__ == "__main__":
    key = jax.random.PRNGKey(0)
    num_states, num_act1, num_act2 = 32, 4, 4
    ks, ka1, ka2, kp, kb = jax.random.split(key, 5)
    params = init_params(kp, num_states, num_act1, num_act2)

    # Tolerance note: the kernel folds BN into bf16 weights while the reference
    # applies BN on activations with unfolded bf16 weights; both paths accumulate
    # in f32, so expected deviation is ~1e-3 (bf16 re-rounding only).
    TOL = 1e-2

    # Case 1: tiny batch (single full-array block).
    B = 2
    state = jax.random.normal(ks, (B, num_states), jnp.float32)
    act1 = jax.random.normal(ka1, (B, num_act1), jnp.float32)
    act2 = jax.random.normal(ka2, (B, num_act2), jnp.float32)
    out = jax.block_until_ready(centralized_critic_forward(state, act1, act2, params))
    ref = critic_reference(state, act1, act2, params)
    assert out.shape == (B, 1)
    assert jnp.allclose(out, ref, atol=TOL), "mismatch vs JAX reference (B=2)"

    # Case 2: batch larger than one tile and not a multiple of it
    # (exercises the multi-block grid, even tile count, batch padding, slicing).
    B2 = 2500
    kbs, kba1, kba2 = jax.random.split(kb, 3)
    state2 = jax.random.normal(kbs, (B2, num_states), jnp.float32)
    act1_2 = jax.random.normal(kba1, (B2, num_act1), jnp.float32)
    act2_2 = jax.random.normal(kba2, (B2, num_act2), jnp.float32)
    out2 = jax.block_until_ready(centralized_critic_forward(state2, act1_2, act2_2, params))
    ref2 = critic_reference(state2, act1_2, act2_2, params)
    assert out2.shape == (B2, 1)
    assert jnp.allclose(out2, ref2, atol=TOL), "mismatch vs JAX reference (B=2500)"

    print("KERNEL_OK")
</pallas_src>

<mosaic_0001>
module attributes {stable_mosaic.version = 11 : i64} {
  func.func @critic_kernel(%arg0: i32, %arg1: memref<2x32xf32, #tpu.memory_space<vmem>>, %arg2: memref<2x8xf32, #tpu.memory_space<vmem>>, %arg3: memref<32x256xbf16, #tpu.memory_space<vmem>>, %arg4: memref<1x256xf32, #tpu.memory_space<vmem>>, %arg5: memref<256x64xbf16, #tpu.memory_space<vmem>>, %arg6: memref<1x64xf32, #tpu.memory_space<vmem>>, %arg7: memref<8x128xbf16, #tpu.memory_space<vmem>>, %arg8: memref<1x128xf32, #tpu.memory_space<vmem>>, %arg9: memref<128x128xbf16, #tpu.memory_space<vmem>>, %arg10: memref<1x128xf32, #tpu.memory_space<vmem>>, %arg11: memref<64x64xbf16, #tpu.memory_space<vmem>>, %arg12: memref<128x64xbf16, #tpu.memory_space<vmem>>, %arg13: memref<1x64xf32, #tpu.memory_space<vmem>>, %arg14: memref<64x64xbf16, #tpu.memory_space<vmem>>, %arg15: memref<1x64xf32, #tpu.memory_space<vmem>>, %arg16: memref<1x64xbf16, #tpu.memory_space<vmem>>, %arg17: memref<1x1xf32, #tpu.memory_space<vmem>>, %arg18: memref<1x2xf32, #tpu.memory_space<vmem>>) attributes {dimension_semantics = [#tpu.dimension_semantics<parallel>], iteration_bounds = array<i64: 1>, scalar_prefetch = 0 : i64, scratch_operands = 0 : i64, tpu.core_type = #tpu.core_type<tc>, window_params = [{transform_indices = @transform_0, window_bounds = array<i64: 2, 32>}, {transform_indices = @transform_1, window_bounds = array<i64: 2, 8>}, {pipeline_mode = #tpu.pipeline_mode<synchronous>, transform_indices = @transform_2, window_bounds = array<i64: 32, 256>}, {pipeline_mode = #tpu.pipeline_mode<synchronous>, transform_indices = @transform_3, window_bounds = array<i64: 1, 256>}, {pipeline_mode = #tpu.pipeline_mode<synchronous>, transform_indices = @transform_4, window_bounds = array<i64: 256, 64>}, {pipeline_mode = #tpu.pipeline_mode<synchronous>, transform_indices = @transform_5, window_bounds = array<i64: 1, 64>}, {pipeline_mode = #tpu.pipeline_mode<synchronous>, transform_indices = @transform_6, window_bounds = array<i64: 8, 128>}, {pipeline_mode = #tpu.pipeline_mode<synchronous>, transform_indices = @transform_7, window_bounds = array<i64: 1, 128>}, {pipeline_mode = #tpu.pipeline_mode<synchronous>, transform_indices = @transform_8, window_bounds = array<i64: 128, 128>}, {pipeline_mode = #tpu.pipeline_mode<synchronous>, transform_indices = @transform_9, window_bounds = array<i64: 1, 128>}, {pipeline_mode = #tpu.pipeline_mode<synchronous>, transform_indices = @transform_10, window_bounds = array<i64: 64, 64>}, {pipeline_mode = #tpu.pipeline_mode<synchronous>, transform_indices = @transform_11, window_bounds = array<i64: 128, 64>}, {pipeline_mode = #tpu.pipeline_mode<synchronous>, transform_indices = @transform_12, window_bounds = array<i64: 1, 64>}, {pipeline_mode = #tpu.pipeline_mode<synchronous>, transform_indices = @transform_13, window_bounds = array<i64: 64, 64>}, {pipeline_mode = #tpu.pipeline_mode<synchronous>, transform_indices = @transform_14, window_bounds = array<i64: 1, 64>}, {pipeline_mode = #tpu.pipeline_mode<synchronous>, transform_indices = @transform_15, window_bounds = array<i64: 1, 64>}, {pipeline_mode = #tpu.pipeline_mode<synchronous>, transform_indices = @transform_16, window_bounds = array<i64: 1, 1>}, {transform_indices = @transform_17, window_bounds = array<i64: 1, 2>}]} {
    %c0 = arith.constant 0 : index
    %c0_0 = arith.constant 0 : index
    %0 = vector.load %arg1[%c0, %c0_0] : memref<2x32xf32, #tpu.memory_space<vmem>>, vector<2x32xf32>
    %1 = arith.truncf %0 : vector<2x32xf32> to vector<2x32xbf16>
    %c0_1 = arith.constant 0 : index
    %c0_2 = arith.constant 0 : index
    %2 = vector.load %arg3[%c0_1, %c0_2] : memref<32x256xbf16, #tpu.memory_space<vmem>>, vector<32x256xbf16>
    %cst = arith.constant dense<0.000000e+00> : vector<2x256xf32>
    %3 = tpu.matmul %1, %2, %cst {dimension_numbers = #tpu.dot_dimension_numbers<[1], [0], [0], [1], [0, 0, 1, 1], [], []>} : vector<2x32xbf16>, vector<32x256xbf16>, vector<2x256xf32> -> vector<2x256xf32>
    %c0_3 = arith.constant 0 : index
    %c0_4 = arith.constant 0 : index
    %4 = vector.load %arg4[%c0_3, %c0_4] : memref<1x256xf32, #tpu.memory_space<vmem>>, vector<1x256xf32>
    %5 = vector.broadcast %4 : vector<1x256xf32> to vector<2x256xf32>
    %6 = arith.addf %3, %5 : vector<2x256xf32>
    %cst_5 = arith.constant 0.000000e+00 : f32
    %7 = vector.broadcast %cst_5 : f32 to vector<2x256xf32>
    %8 = arith.maximumf %6, %7 : vector<2x256xf32>
    %9 = arith.truncf %8 : vector<2x256xf32> to vector<2x256xbf16>
    %c0_6 = arith.constant 0 : index
    %c0_7 = arith.constant 0 : index
    %10 = vector.load %arg5[%c0_6, %c0_7] : memref<256x64xbf16, #tpu.memory_space<vmem>>, vector<256x64xbf16>
    %cst_8 = arith.constant dense<0.000000e+00> : vector<2x64xf32>
    %11 = tpu.matmul %9, %10, %cst_8 {dimension_numbers = #tpu.dot_dimension_numbers<[1], [0], [0], [1], [0, 0, 1, 1], [], []>} : vector<2x256xbf16>, vector<256x64xbf16>, vector<2x64xf32> -> vector<2x64xf32>
    %c0_9 = arith.constant 0 : index
    %c0_10 = arith.constant 0 : index
    %12 = vector.load %arg6[%c0_9, %c0_10] : memref<1x64xf32, #tpu.memory_space<vmem>>, vector<1x64xf32>
    %13 = vector.broadcast %12 : vector<1x64xf32> to vector<2x64xf32>
    %14 = arith.addf %11, %13 : vector<2x64xf32>
    %cst_11 = arith.constant 0.000000e+00 : f32
    %15 = vector.broadcast %cst_11 : f32 to vector<2x64xf32>
    %16 = arith.maximumf %14, %15 : vector<2x64xf32>
    %c0_12 = arith.constant 0 : index
    %c0_13 = arith.constant 0 : index
    %17 = vector.load %arg2[%c0_12, %c0_13] : memref<2x8xf32, #tpu.memory_space<vmem>>, vector<2x8xf32>
    %18 = arith.truncf %17 : vector<2x8xf32> to vector<2x8xbf16>
    %c0_14 = arith.constant 0 : index
    %c0_15 = arith.constant 0 : index
    %19 = vector.load %arg7[%c0_14, %c0_15] : memref<8x128xbf16, #tpu.memory_space<vmem>>, vector<8x128xbf16>
    %cst_16 = arith.constant dense<0.000000e+00> : vector<2x128xf32>
    %20 = tpu.matmul %18, %19, %cst_16 {dimension_numbers = #tpu.dot_dimension_numbers<[1], [0], [0], [1], [0, 0, 1, 1], [], []>} : vector<2x8xbf16>, vector<8x128xbf16>, vector<2x128xf32> -> vector<2x128xf32>
    %c0_17 = arith.constant 0 : index
    %c0_18 = arith.constant 0 : index
    %21 = vector.load %arg8[%c0_17, %c0_18] : memref<1x128xf32, #tpu.memory_space<vmem>>, vector<1x128xf32>
    %22 = vector.broadcast %21 : vector<1x128xf32> to vector<2x128xf32>
    %23 = arith.addf %20, %22 : vector<2x128xf32>
    %cst_19 = arith.constant 0.000000e+00 : f32
    %24 = vector.broadcast %cst_19 : f32 to vector<2x128xf32>
    %25 = arith.maximumf %23, %24 : vector<2x128xf32>
    %26 = arith.truncf %25 : vector<2x128xf32> to vector<2x128xbf16>
    %c0_20 = arith.constant 0 : index
    %c0_21 = arith.constant 0 : index
    %27 = vector.load %arg9[%c0_20, %c0_21] : memref<128x128xbf16, #tpu.memory_space<vmem>>, vector<128x128xbf16>
    %cst_22 = arith.constant dense<0.000000e+00> : vector<2x128xf32>
    %28 = tpu.matmul %26, %27, %cst_22 {dimension_numbers = #tpu.dot_dimension_numbers<[1], [0], [0], [1], [0, 0, 1, 1], [], []>} : vector<2x128xbf16>, vector<128x128xbf16>, vector<2x128xf32> -> vector<2x128xf32>
    %c0_23 = arith.constant 0 : index
    %c0_24 = arith.constant 0 : index
    %29 = vector.load %arg10[%c0_23, %c0_24] : memref<1x128xf32, #tpu.memory_space<vmem>>, vector<1x128xf32>
    %30 = vector.broadcast %29 : vector<1x128xf32> to vector<2x128xf32>
    %31 = arith.addf %28, %30 : vector<2x128xf32>
    %cst_25 = arith.constant 0.000000e+00 : f32
    %32 = vector.broadcast %cst_25 : f32 to vector<2x128xf32>
    %33 = arith.maximumf %31, %32 : vector<2x128xf32>
    %34 = arith.truncf %16 : vector<2x64xf32> to vector<2x64xbf16>
    %c0_26 = arith.constant 0 : index
    %c0_27 = arith.constant 0 : index
    %35 = vector.load %arg11[%c0_26, %c0_27] : memref<64x64xbf16, #tpu.memory_space<vmem>>, vector<64x64xbf16>
    %cst_28 = arith.constant dense<0.000000e+00> : vector<2x64xf32>
    %36 = tpu.matmul %34, %35, %cst_28 {dimension_numbers = #tpu.dot_dimension_numbers<[1], [0], [0], [1], [0, 0, 1, 1], [], []>} : vector<2x64xbf16>, vector<64x64xbf16>, vector<2x64xf32> -> vector<2x64xf32>
    %37 = arith.truncf %33 : vector<2x128xf32> to vector<2x128xbf16>
    %c0_29 = arith.constant 0 : index
    %c0_30 = arith.constant 0 : index
    %38 = vector.load %arg12[%c0_29, %c0_30] : memref<128x64xbf16, #tpu.memory_space<vmem>>, vector<128x64xbf16>
    %cst_31 = arith.constant dense<0.000000e+00> : vector<2x64xf32>
    %39 = tpu.matmul %37, %38, %cst_31 {dimension_numbers = #tpu.dot_dimension_numbers<[1], [0], [0], [1], [0, 0, 1, 1], [], []>} : vector<2x128xbf16>, vector<128x64xbf16>, vector<2x64xf32> -> vector<2x64xf32>
    %40 = arith.addf %36, %39 : vector<2x64xf32>
    %c0_32 = arith.constant 0 : index
    %c0_33 = arith.constant 0 : index
    %41 = vector.load %arg13[%c0_32, %c0_33] : memref<1x64xf32, #tpu.memory_space<vmem>>, vector<1x64xf32>
    %42 = vector.broadcast %41 : vector<1x64xf32> to vector<2x64xf32>
    %43 = arith.addf %40, %42 : vector<2x64xf32>
    %cst_34 = arith.constant 0.000000e+00 : f32
    %44 = vector.broadcast %cst_34 : f32 to vector<2x64xf32>
    %45 = arith.maximumf %43, %44 : vector<2x64xf32>
    %46 = arith.truncf %45 : vector<2x64xf32> to vector<2x64xbf16>
    %c0_35 = arith.constant 0 : index
    %c0_36 = arith.constant 0 : index
    %47 = vector.load %arg14[%c0_35, %c0_36] : memref<64x64xbf16, #tpu.memory_space<vmem>>, vector<64x64xbf16>
    %cst_37 = arith.constant dense<0.000000e+00> : vector<2x64xf32>
    %48 = tpu.matmul %46, %47, %cst_37 {dimension_numbers = #tpu.dot_dimension_numbers<[1], [0], [0], [1], [0, 0, 1, 1], [], []>} : vector<2x64xbf16>, vector<64x64xbf16>, vector<2x64xf32> -> vector<2x64xf32>
    %c0_38 = arith.constant 0 : index
    %c0_39 = arith.constant 0 : index
    %49 = vector.load %arg15[%c0_38, %c0_39] : memref<1x64xf32, #tpu.memory_space<vmem>>, vector<1x64xf32>
    %50 = vector.broadcast %49 : vector<1x64xf32> to vector<2x64xf32>
    %51 = arith.addf %48, %50 : vector<2x64xf32>
    %cst_40 = arith.constant 0.000000e+00 : f32
    %52 = vector.broadcast %cst_40 : f32 to vector<2x64xf32>
    %53 = arith.maximumf %51, %52 : vector<2x64xf32>
    %c0_41 = arith.constant 0 : index
    %c0_42 = arith.constant 0 : index
    %54 = vector.load %arg16[%c0_41, %c0_42] : memref<1x64xbf16, #tpu.memory_space<vmem>>, vector<1x64xbf16>
    %55 = arith.truncf %53 : vector<2x64xf32> to vector<2x64xbf16>
    %cst_43 = arith.constant dense<0.000000e+00> : vector<1x2xf32>
    %56 = tpu.matmul %54, %55, %cst_43 {dimension_numbers = #tpu.dot_dimension_numbers<[1], [1], [0], [0], [0, 0, 1, 0], [], []>} : vector<1x64xbf16>, vector<2x64xbf16>, vector<1x2xf32> -> vector<1x2xf32>
    %c0_44 = arith.constant 0 : index
    %c0_45 = arith.constant 0 : index
    %57 = vector.load %arg17[%c0_44, %c0_45] : memref<1x1xf32, #tpu.memory_space<vmem>>, vector<1x1xf32>
    %58 = vector.broadcast %57 : vector<1x1xf32> to vector<1x2xf32>
    %59 = arith.addf %56, %58 : vector<1x2xf32>
    %c0_46 = arith.constant 0 : index
    %c0_47 = arith.constant 0 : index
    %60 = vector.load %arg18[%c0_46, %c0_47] : memref<1x2xf32, #tpu.memory_space<vmem>>, vector<1x2xf32>
    tpu.vector_store %arg18[%c0_46, %c0_47], %59 {strides = array<i32>} : memref<1x2xf32, #tpu.memory_space<vmem>>, vector<1x2xf32>,
    return
  }
  func.func @transform_0(%arg0: i32) -> (i32, i32) {
    %c0_i32 = arith.constant 0 : i32
    %c0_i32_0 = arith.constant 0 : i32
    return %arg0, %c0_i32 : i32, i32
  }
  func.func @transform_1(%arg0: i32) -> (i32, i32) {
    %c0_i32 = arith.constant 0 : i32
    %c0_i32_0 = arith.constant 0 : i32
    return %arg0, %c0_i32 : i32, i32
  }
  func.func @transform_2(%arg0: i32) -> (i32, i32) {
    %c0_i32 = arith.constant 0 : i32
    %c0_i32_0 = arith.constant 0 : i32
    %c0_i32_1 = arith.constant 0 : i32
    return %c0_i32, %c0_i32_0 : i32, i32
  }
  func.func @transform_3(%arg0: i32) -> (i32, i32) {
    %c0_i32 = arith.constant 0 : i32
    %c0_i32_0 = arith.constant 0 : i32
    %c0_i32_1 = arith.constant 0 : i32
    return %c0_i32, %c0_i32_0 : i32, i32
  }
  func.func @transform_4(%arg0: i32) -> (i32, i32) {
    %c0_i32 = arith.constant 0 : i32
    %c0_i32_0 = arith.constant 0 : i32
    %c0_i32_1 = arith.constant 0 : i32
    return %c0_i32, %c0_i32_0 : i32, i32
  }
  func.func @transform_5(%arg0: i32) -> (i32, i32) {
    %c0_i32 = arith.constant 0 : i32
    %c0_i32_0 = arith.constant 0 : i32
    %c0_i32_1 = arith.constant 0 : i32
    return %c0_i32, %c0_i32_0 : i32, i32
  }
  func.func @transform_6(%arg0: i32) -> (i32, i32) {
    %c0_i32 = arith.constant 0 : i32
    %c0_i32_0 = arith.constant 0 : i32
    %c0_i32_1 = arith.constant 0 : i32
    return %c0_i32, %c0_i32_0 : i32, i32
  }
  func.func @transform_7(%arg0: i32) -> (i32, i32) {
    %c0_i32 = arith.constant 0 : i32
    %c0_i32_0 = arith.constant 0 : i32
    %c0_i32_1 = arith.constant 0 : i32
    return %c0_i32, %c0_i32_0 : i32, i32
  }
  func.func @transform_8(%arg0: i32) -> (i32, i32) {
    %c0_i32 = arith.constant 0 : i32
    %c0_i32_0 = arith.constant 0 : i32
    %c0_i32_1 = arith.constant 0 : i32
    return %c0_i32, %c0_i32_0 : i32, i32
  }
  func.func @transform_9(%arg0: i32) -> (i32, i32) {
    %c0_i32 = arith.constant 0 : i32
    %c0_i32_0 = arith.constant 0 : i32
    %c0_i32_1 = arith.constant 0 : i32
    return %c0_i32, %c0_i32_0 : i32, i32
  }
  func.func @transform_10(%arg0: i32) -> (i32, i32) {
    %c0_i32 = arith.constant 0 : i32
    %c0_i32_0 = arith.constant 0 : i32
    %c0_i32_1 = arith.constant 0 : i32
    return %c0_i32, %c0_i32_0 : i32, i32
  }
  func.func @transform_11(%arg0: i32) -> (i32, i32) {
    %c0_i32 = arith.constant 0 : i32
    %c0_i32_0 = arith.constant 0 : i32
    %c0_i32_1 = arith.constant 0 : i32
    return %c0_i32, %c0_i32_0 : i32, i32
  }
  func.func @transform_12(%arg0: i32) -> (i32, i32) {
    %c0_i32 = arith.constant 0 : i32
    %c0_i32_0 = arith.constant 0 : i32
    %c0_i32_1 = arith.constant 0 : i32
    return %c0_i32, %c0_i32_0 : i32, i32
  }
  func.func @transform_13(%arg0: i32) -> (i32, i32) {
    %c0_i32 = arith.constant 0 : i32
    %c0_i32_0 = arith.constant 0 : i32
    %c0_i32_1 = arith.constant 0 : i32
    return %c0_i32, %c0_i32_0 : i32, i32
  }
  func.func @transform_14(%arg0: i32) -> (i32, i32) {
    %c0_i32 = arith.constant 0 : i32
    %c0_i32_0 = arith.constant 0 : i32
    %c0_i32_1 = arith.constant 0 : i32
    return %c0_i32, %c0_i32_0 : i32, i32
  }
  func.func @transform_15(%arg0: i32) -> (i32, i32) {
    %c0_i32 = arith.constant 0 : i32
    %c0_i32_0 = arith.constant 0 : i32
    %c0_i32_1 = arith.constant 0 : i32
    return %c0_i32, %c0_i32_0 : i32, i32
  }
  func.func @transform_16(%arg0: i32) -> (i32, i32) {
    %c0_i32 = arith.constant 0 : i32
    %c0_i32_0 = arith.constant 0 : i32
    %c0_i32_1 = arith.constant 0 : i32
    return %c0_i32, %c0_i32_0 : i32, i32
  }
  func.func @transform_17(%arg0: i32) -> (i32, i32) {
    %c0_i32 = arith.constant 0 : i32
    %c0_i32_0 = arith.constant 0 : i32
    return %c0_i32, %arg0 : i32, i32
  }
}

</mosaic_0001>

<bundles_post_ra>
// kernel: tpu_custom_call.1
= control target key start
LH: loop header
LB: loop body
LE: loop exit
PB: predicated region body
PF: predicated region fallthrough
CT: control target
= control target key end

     0   :  { %s1424_s0 = inlined_call_operand.vmem [shape: f32[2,32], index: 0, kind: input, shape index: {}]   ;;  %s1425_s1 = inlined_call_operand.vmem [shape: f32[2,8], index: 1, kind: input, shape index: {}]   ;;  %s1426_s2 = inlined_call_operand.vmem [shape: bf16[32,256], index: 2, kind: input, shape index: {}]   ;;  %s1427_s3 = inlined_call_operand.vmem [shape: f32[1,256], index: 3, kind: input, shape index: {}]   ;;  %s1428_s4 = inlined_call_operand.vmem [shape: bf16[256,64], index: 4, kind: input, shape index: {}]   ;;  %s1429_s5 = inlined_call_operand.vmem [shape: f32[1,64], index: 5, kind: input, shape index: {}]   ;;  %s1430_s6 = inlined_call_operand.vmem [shape: bf16[8,128], index: 6, kind: input, shape index: {}]   ;;  %s1431_s7 = inlined_call_operand.vmem [shape: f32[1,128], index: 7, kind: input, shape index: {}]   ;;  %s1432_s8 = inlined_call_operand.vmem [shape: bf16[128,128], index: 8, kind: input, shape index: {}]   ;;  %s1433_s9 = inlined_call_operand.vmem [shape: f32[1,128], index: 9, kind: input, shape index: {}]   ;;  %s1434_s10 = inlined_call_operand.vmem [shape: bf16[64,64], index: 10, kind: input, shape index: {}]   ;;  %s1435_s11 = inlined_call_operand.vmem [shape: bf16[128,64], index: 11, kind: input, shape index: {}]   ;;  %s1436_s12 = inlined_call_operand.vmem [shape: f32[1,64], index: 12, kind: input, shape index: {}]   ;;  %s1437_s13 = inlined_call_operand.vmem [shape: bf16[64,64], index: 13, kind: input, shape index: {}]   ;;  %s1438_s14 = inlined_call_operand.vmem [shape: f32[1,64], index: 14, kind: input, shape index: {}]   ;;  %s1439_s15 = inlined_call_operand.vmem [shape: bf16[1,64], index: 15, kind: input, shape index: {}]   ;;  %s1440_s16 = inlined_call_operand.<no memory space> [shape: f32[1,1], index: 16, kind: input, shape index: {}]   ;;  %s1441_s17 = inlined_call_operand.hbm [shape: f32[1,2], index: 17, kind: output, shape index: {}]  }
   0x1   :  { %1442 = sst [smem:[#allocation6_spill]] %s1424_s0  ;;  %v22_v0 = vstv %s1440_s16 }
   0x2   :  { %1443 = sst [smem:[#allocation7_spill]] %s1425_s1  ;;  %23 = vst [vmem:[#allocation2] sm:$0x1] %v22_v0 }
   0x3   :  { %v1033_v1 = vld [vmem:[%s1426_s2 + $0x4] ss:$8 sps:$4 sm:$0xff]   ;;  %v1035_v2 = vld [vmem:[%s1426_s2] ss:$8 sps:$4 sm:$0xff]   ;;  %v1103_v3 = vmov 0   ;;  %s1444_s20 = sld [smem:[#allocation6_spill]] }
   0x4   :  { %134 = vmatprep.mubr.bf16.mxu0 %v1103_v3  ;;  %1032 = vset.pattern.permute.xlu0 %v1103_v3  ;;  %v1036_v4 = vld [vmem:[%s1426_s2 + $0x14] ss:$8 sps:$4 sm:$0xff]   ;;  %v1038_v5 = vld [vmem:[%s1426_s2 + $0x10] ss:$8 sps:$4 sm:$0xff]   ;;  %v325_v7 = vld [vmem:[%s1430_s6] sm:$0xf] }
   0x5   :  { %102 = vmatprep.subr.bf16.mxu0 %v1033_v1  ;;  %v1039_v8 = vld [vmem:[%s1428_s4 + $0x40] sm:$0xff]   ;;  %vm337_vm0 = vcmask 1043456   ;;  %v1041_v11 = vld [vmem:[%s1428_s4 + $0x48] sm:$0xff]   ;;  %vm98_vm1 = vcmask 261120   ;;  %v1104_v12 = vmov 0.0   ;;  %v1044_v15 = vld [vmem:[%s1428_s4 + $0x50] sm:$0xff]  }
   0x6   :  { %103 = vmatpush1.bf16.msra.mxu0 %v1035_v2  ;;  %v1040_v9 = vld [vmem:[%s1428_s4] sm:$0xff]   ;;  %898 = vmatprep.subr.bf16.mxu1 %v1039_v8  ;;  %v339_v13 = vsel %vm337_vm0, %v325_v7, 0  ;;  %v1042_v14 = vld [vmem:[%s1428_s4 + $0x8] sm:$0xff]   ;;  %vm1105_vm2 = vmmov 0   ;;  %s1445_s16 = sld [smem:[#allocation7_spill]]  ;;  %v1045_v17 = vld [vmem:[%s1428_s4 + $0x10] sm:$0xff]  }
   0x7   :  { %104 = vmatprep.subr.bf16.mxu0 %v1036_v4  ;;  %899 = vmatpush3.bf16.msra.mxu1 %v1040_v9  ;;  %v1047_v18 = vld [vmem:[%s1428_s4 + $0x58] sm:$0xff]   ;;  %vm333_vm3 = vcmask 64512   ;;  %v1043_v20 = vld [vmem:[%s1432_s8] sm:$0xff]   ;;  %v1046_v23 = vld [vmem:[%s1432_s8 + $0x8] sm:$0xff]  }
   0x8   :  { %900 = vmatprep.subr.bf16.mxu1 %v1041_v11  ;;  %v1048_v21 = vld [vmem:[%s1428_s4 + $0x18] sm:$0xff]   ;;  %v1050_v22 = vld [vmem:[%s1428_s4 + $0x60] sm:$0xff]   ;;  %v1053_v25 = vld [vmem:[%s1428_s4 + $0x68] sm:$0xff]  }
   0x9   :  { %v60_v6 = vld [vmem:[%s1444_s20] sm:$0x3]  ;;  %v1049_v26 = vld [vmem:[%s1432_s8 + $0x10] sm:$0xff]   ;;  %v1054_v27 = vld [vmem:[%s1428_s4 + $0x28] sm:$0xff]  }
   0xa   :  { %v61_v10 = vpack.c.bf16 %v60_v6, %v60_v6  ;;  %105 = vmatpush1.bf16.msra.mxu0 %v1038_v5  ;;  %v1051_v24 = vld [vmem:[%s1428_s4 + $0x20] sm:$0xff]   ;;  %v1052_v28 = vld [vmem:[%s1432_s8 + $0x18] sm:$0xff]  }
   0xb   :  { %952 = vmatprep.subr.bf16.mxu0 %v1104_v12  ;;  %901 = vmatpush3.bf16.msra.mxu1 %v1042_v14 }
   0xc   :  { %v323_v16 = vld [vmem:[%s1445_s16] sm:$0x3]  ;;  %902 = vmatprep.subr.bf16.mxu1 %v1044_v15 }
   0xd   :  { %848 = vmatmul.mubr.msk.bf16.vlgmr.msra.gmra.mrb[0].mxu0 %vm98_vm1, %v61_v10  ;;  %v324_v19 = vpack.c.bf16 %v323_v16, %v323_v16 }
   0xe   :  { %953 = vmatpush3.bf16.msra.mxu0 %v339_v13  ;;  %954 = vmatprep.mubr.msk.bf16.mxu0 %vm1105_vm2, %v1104_v12 }
   0xf   :  { %958 = vmatprep.subr.bf16.mxu0 %v1104_v12  ;;  %903 = vmatpush3.bf16.msra.mxu1 %v1045_v17 }
  0x10   :  { %904 = vmatprep.subr.bf16.mxu1 %v1047_v18 }
  0x13   :  { %905 = vmatpush3.bf16.msra.mxu1 %v1048_v21 }
  0x14   :  { %906 = vmatprep.subr.bf16.mxu1 %v1050_v22 }
  0x15   :  { %955 = vmatmul.mubr.msk.bf16.vlgmr.msra.gmra.mrb[4].mxu0 %vm333_vm3, %v324_v19 }
  0x16   :  { %959 = vmatpush3.bf16.msra.mxu0 %v1043_v20  ;;  %974 = vmatprep.mubr.msk.bf16.mxu0 %vm1105_vm2, %v1104_v12 }
  0x17   :  { %960 = vmatprep.subr.bf16.mxu0 %v1104_v12  ;;  %907 = vmatpush3.bf16.msra.mxu1 %v1051_v24 }
  0x18   :  { %908 = vmatprep.subr.bf16.mxu1 %v1053_v25 }
  0x1a   :  { %961 = vmatpush3.bf16.msra.mxu0 %v1046_v23 }
  0x1b   :  { %962 = vmatprep.subr.bf16.mxu0 %v1104_v12  ;;  %909 = vmatpush3.bf16.msra.mxu1 %v1054_v27 }
  0x1e   :  { %963 = vmatpush3.bf16.msra.mxu0 %v1049_v26 }
  0x1f   :  { %964 = vmatprep.subr.bf16.mxu0 %v1104_v12 }
  0x22   :  { %965 = vmatpush3.bf16.msra.mxu0 %v1052_v28 }
  0x23   :  { %966 = vmatprep.subr.bf16.mxu0 %v1104_v12 }
  0x24   :  { %24 = vsyncpa [#allocation4], 0  ;;  %v1055_v29 = vld [vmem:[%s1432_s8 + $0x20] sm:$0xff]   ;;  %v1056_v30 = vld [vmem:[%s1428_s4 + $0x70] sm:$0xff]   ;;  %v68_v37 = vlaneseq  ;;  %vm633_vm4 = vcmask 523264   ;;  %vm828_vm5 = vcmask 8192  }
  0x25   :  { %v1057_v31 = vld [vmem:[%s1428_s4 + $0x30] sm:$0xff]   ;;  %910 = vmatprep.subr.bf16.mxu1 %v1056_v30  ;;  %v1058_v32 = vld [vmem:[%s1432_s8 + $0x28] sm:$0xff]   ;;  %v1059_v33 = vld [vmem:[%s1428_s4 + $0x78] sm:$0xff]  }
  0x26   :  { %967 = vmatpush3.bf16.msra.mxu0 %v1055_v29  ;;  %911 = vmatpush3.bf16.msra.mxu1 %v1057_v31  ;;  %v1060_v34 = vld [vmem:[%s1428_s4 + $0x38] sm:$0xff]   ;;  %v1061_v35 = vld [vmem:[%s1432_s8 + $0x30] sm:$0xff]   ;;  %v1308_v38 = vshrl.u32 %v68_v37, 7  ;;  %v66_v40 = vld [vmem:[%s1427_s3] sm:$0x3] }
  0x27   :  { %968 = vmatprep.subr.bf16.mxu0 %v1104_v12  ;;  %912 = vmatprep.subr.bf16.mxu1 %v1059_v33  ;;  %v1062_v36 = vld [vmem:[%s1432_s8 + $0x38] sm:$0xff]   ;;  %v866_v53 = vld [vmem:[%s1431_s7] ss:$0 sm:$0xff]  ;;  %v1064_v60 = vld [vmem:[%s1435_s11 + $0x8] sm:$0xff]  }
  0x28   :  { %v70_v39 = vsub.s32 0, %v1308_v38  ;;  %v74_v41 = vsub.s32 1, %v1308_v38  ;;  %v1063_v54 = vld [vmem:[%s1435_s11] sm:$0xff]   ;;  %v1065_v1 = vld [vmem:[%s1435_s11 + $0x10] sm:$0xff]   ;;  %v1069_v2 = vld [vmem:[%s1434_s10 + $0x8] sm:$0xff]  }
  0x29   :  { %v1067_v63 = vld [vmem:[%s1434_s10] sm:$0xff]   ;;  %v1066_v3 = vld [vmem:[%s1435_s11 + $0x18] sm:$0xff]   ;;  %v1070_v5 = vld [vmem:[%s1435_s11 + $0x28] sm:$0xff]  }
  0x2a   :  { %969 = vmatpush3.bf16.msra.mxu0 %v1058_v32  ;;  %913 = vmatpush3.bf16.msra.mxu1 %v1060_v34  ;;  %v71_v42 = vrot.slane %v66_v40, %v70_v39  ;;  %v75_v43 = vrot.slane %v66_v40, %v74_v41  ;;  %v1068_v4 = vld [vmem:[%s1435_s11 + $0x20] sm:$0xff]   ;;  %v1071_v6 = vld [vmem:[%s1434_s10 + $0x10] sm:$0xff]   ;;  %v1073_v8 = vld [vmem:[%s1434_s10 + $0x18] sm:$0xff]  }
  0x2b   :  { %970 = vmatprep.subr.bf16.mxu0 %v1104_v12  ;;  %978 = vmatprep.subr.bf16.mxu1 %v1104_v12  ;;  %v1072_v7 = vld [vmem:[%s1435_s11 + $0x30] sm:$0xff]   ;;  %v1074_v9 = vld [vmem:[%s1435_s11 + $0x38] sm:$0xff]   ;;  %v849_v11 = vld [vmem:[%s1429_s5] ss:$0 sm:$0xff] }
  0x2c   :  { %v868_v18 = vld [vmem:[%s1433_s9] ss:$0 sm:$0xff]  ;;  %v1076_v29 = vld [vmem:[%s1437_s13 + $0x8] sm:$0xff]   ;;  %v1077_v30 = vld [vmem:[%s1437_s13 + $0x10] sm:$0xff]  }
  0x2d   :  { %v1075_v23 = vld [vmem:[%s1437_s13] sm:$0xff]   ;;  %v1078_v31 = vld [vmem:[%s1437_s13 + $0x18] sm:$0xff]  }
  0x2e   :  { %971 = vmatpush3.bf16.msra.mxu0 %v1061_v35 }
  0x2f   :  { %972 = vmatprep.subr.bf16.mxu0 %v1104_v12 }
  0x32   :  { %973 = vmatpush3.bf16.msra.mxu0 %v1062_v36  ;;  %v890_v36 = vld [vmem:[%s1436_s12] ss:$0 sm:$0xff] }
  0x33   :  { %998 = vmatprep.subr.bf16.mxu0 %v1104_v12 }
  0xe0   :  { %v136_v44 = vpop.f32.mrb[0].mxu0 }
  0xe1   :  { %v137_v45 = vadd.f32 %v136_v44, %v71_v42  ;;  %v138_v46 = vpop.f32.mrb[1].mxu0 }
  0xe2   :  { %v139_v47 = vadd.f32 %v138_v46, %v75_v43  ;;  %v140_v48 = vpop.f32.mrb[2].mxu0  ;;  %v772_v46 = vld [vmem:[#allocation2] sm:$0x1] }
  0xe3   :  { %v143_v49 = vmax.f32 %v137_v45, 0.0  ;;  %v141_v50 = vpop.f32.mrb[3].mxu0  ;;  %775 = vperm.xlu0 %1032, %v772_v46  }
  0xe4   :  { %v144_v51 = vmax.f32 %v139_v47, 0.0  ;;  %v891_v47 = vld [vmem:[%s1438_s14] ss:$0 sm:$0xff]  ;;  %s1106_s14 = smov [#allocation3]  }
  0xe5   :  { %v145_v55 = vpack.c.bf16 %v143_v49, %v143_v49  ;;  %s836_s18 = sshll.u32 %s1106_s14, 4  ;;  %s837_s18 = int_to_ptr.vmem [resolvable:$true] %s836_s18 }
  0xe6   :  { %v146_v52 = vpack.c.bf16 %v144_v51, %v144_v51  ;;  %s1079_s16 = scalar_lea.vmem %s837_s18, 16  ;;  %s1083_s19 = scalar_lea.vmem %s837_s18, 32 }
  0xe7   :  { %p1080_p0 = scmp.ne.s32.totalorder %s837_s18, %s1079_s16  ;;  %p1084_p1 = scmp.lt.s32.totalorder %s837_s18, %s837_s18 }
  0xe8   :  { %314 = vmatprep.mubr.bf16.mxu1 %v146_v52  ;;  %v375_v56 = vpop.f32.mrb[4].mxu0  ;;  %p1085_p2 = scmp.lt.s32.totalorder %s1083_s19, %s1079_s16 }
  0xe9   :  { %v376_v57 = vadd.f32 %v866_v53, %v375_v56  ;;  %315 = vmatmul.mubr.bf16.vlgmr.msra.gmra.mrb[0].mxu1 %v145_v55  ;;  %v956_v58 = vpop.f32.mrb[5].mxu0  ;;  %v770_v56 = vld [vmem:[%s1439_s15] sm:$0x1] }
  0xea   :  { %v378_v59 = vpop.f32.mrb[6].mxu0  ;;  %979 = vmatpush3.bf16.msra.mxu1 %v1063_v54  ;;  %994 = vmatprep.mubr.msk.bf16.mxu1 %vm1105_vm2, %v1104_v12  ;;  %p1086_p3 = por %p1085_p2, %p1084_p1 }
  0xeb   :  { %v381_v61 = vmax.f32 %v376_v57, 0.0  ;;  %v957_v62 = vpop.f32.mrb[7].mxu0  ;;  %980 = vmatprep.subr.bf16.mxu1 %v1104_v12 }
  0xec   :  { %p1087_p4 = pnand %p1086_p3, %p1080_p0 }
  0xed   :  { %v382_v0 = vpack.c.bf16 %v381_v61, %v381_v61 }
  0xee   :  { %981 = vmatpush3.bf16.msra.mxu1 %v1064_v60 }
  0xef   :  { %975 = vmatmul.mubr.bf16.vlgmr.msra.gmra.mrb[8].mxu0 %v382_v0  ;;  %982 = vmatprep.subr.bf16.mxu1 %v1104_v12 }
  0xf0   :  { %999 = vmatpush3.bf16.msra.mxu0 %v1067_v63  ;;  %1006 = vmatprep.mubr.msk.bf16.mxu0 %vm1105_vm2, %v1104_v12 }
  0xf1   :  { %1000 = vmatprep.subr.bf16.mxu0 %v1104_v12 }
  0xf2   :  { %983 = vmatpush3.bf16.msra.mxu1 %v1065_v1 }
  0xf3   :  { %984 = vmatprep.subr.bf16.mxu1 %v1104_v12 }
  0xf4   :  { %1001 = vmatpush3.bf16.msra.mxu0 %v1069_v2 }
  0xf5   :  { %1002 = vmatprep.subr.bf16.mxu0 %v1104_v12 }
  0xf6   :  { %985 = vmatpush3.bf16.msra.mxu1 %v1066_v3 }
  0xf7   :  { %986 = vmatprep.subr.bf16.mxu1 %v1104_v12 }
  0xf8   :  { %1003 = vmatpush3.bf16.msra.mxu0 %v1071_v6 }
  0xf9   :  { %1004 = vmatprep.subr.bf16.mxu0 %v1104_v12 }
  0xfa   :  { %987 = vmatpush3.bf16.msra.mxu1 %v1068_v4 }
  0xfb   :  { %988 = vmatprep.subr.bf16.mxu1 %v1104_v12 }
  0xfc   :  { %1005 = vmatpush3.bf16.msra.mxu0 %v1073_v8 }
  0xfd   :  { %1010 = vmatprep.subr.bf16.mxu0 %v1104_v12 }
  0xfe   :  { %989 = vmatpush3.bf16.msra.mxu1 %v1070_v5 }
  0xff   :  { %990 = vmatprep.subr.bf16.mxu1 %v1104_v12 }
 0x102   :  { %991 = vmatpush3.bf16.msra.mxu1 %v1072_v7 }
 0x103   :  { %992 = vmatprep.subr.bf16.mxu1 %v1104_v12 }
 0x106   :  { %993 = vmatpush3.bf16.msra.mxu1 %v1074_v9 }
 0x107   :  { %1022 = vmatprep.subr.bf16.mxu1 %v1104_v12 }
 0x162   :  { %v776_v57 = vpop.permute.xlu0 %775 }
 0x163   :  { %v781_v58 = vrot.slane %v776_v57, %v70_v39 }
 0x1bc   :  { %v914_v10 = vpop.f32.mrb[0].mxu1 }
 0x1bd   :  { %v915_v13 = vpop.f32.mrb[1].mxu1 }
 0x1be   :  { %v916_v14 = vadd.f32 %v915_v13, %v914_v10  ;;  %v917_v15 = vpop.f32.mrb[2].mxu1 }
 0x1bf   :  { %v918_v16 = vpop.f32.mrb[3].mxu1 }
 0x1c0   :  { %v317_v17 = vadd.f32 %v916_v14, %v849_v11 }
 0x1c2   :  { %v322_v19 = vmax.f32 %v317_v17, 0.0  ;;  %v488_v20 = vpop.f32.mrb[8].mxu0 }
 0x1c3   :  { %v489_v21 = vadd.f32 %v868_v18, %v488_v20  ;;  %v976_v22 = vpop.f32.mrb[9].mxu0 }
 0x1c4   :  { %v495_v24 = vpack.c.bf16 %v322_v19, %v322_v19  ;;  %v491_v25 = vpop.f32.mrb[10].mxu0 }
 0x1c5   :  { %v494_v26 = vmax.f32 %v489_v21, 0.0  ;;  %v977_v27 = vpop.f32.mrb[11].mxu0 }
 0x1c6   :  { %1007 = vmatmul.mubr.msk.bf16.vlgmr.msra.gmra.mrb[12].mxu0 %vm633_vm4, %v495_v24 }
 0x1c7   :  { %v504_v28 = vpack.c.bf16 %v494_v26, %v494_v26  ;;  %1011 = vmatpush3.bf16.msra.mxu0 %v1075_v23  ;;  %1018 = vmatprep.mubr.msk.bf16.mxu0 %vm1105_vm2, %v1104_v12 }
 0x1c8   :  { %1012 = vmatprep.subr.bf16.mxu0 %v1104_v12 }
 0x1c9   :  { %995 = vmatmul.mubr.bf16.vlgmr.msra.gmra.mrb[4].mxu1 %v504_v28 }
 0x1ca   :  { %1024 = vmatprep.mubr.msk.bf16.mxu1 %vm1105_vm2, %v1104_v12 }
 0x1cb   :  { %1013 = vmatpush3.bf16.msra.mxu0 %v1076_v29 }
 0x1cc   :  { %1014 = vmatprep.subr.bf16.mxu0 %v1104_v12 }
 0x1cf   :  { %1015 = vmatpush3.bf16.msra.mxu0 %v1077_v30 }
 0x1d0   :  { %1016 = vmatprep.subr.bf16.mxu0 %v1104_v12 }
 0x1d3   :  { %1017 = vmatpush3.bf16.msra.mxu0 %v1078_v31 }
 0x299   :  { %v671_v32 = vpop.f32.mrb[12].mxu0 }
 0x29a   :  { %v1008_v33 = vpop.f32.mrb[13].mxu0 }
 0x29b   :  { %v674_v34 = vpop.f32.mrb[14].mxu0 }
 0x29c   :  { %v603_v35 = vpop.f32.mrb[4].mxu1  ;;  %v1009_v37 = vpop.f32.mrb[15].mxu0 }
 0x29d   :  { %v672_v40 = vadd.f32 %v671_v32, %v603_v35  ;;  %v996_v41 = vpop.f32.mrb[5].mxu1 }
 0x29e   :  { %v606_v42 = vpop.f32.mrb[6].mxu1 }
 0x29f   :  { %v684_v43 = vadd.f32 %v890_v36, %v672_v40  ;;  %v997_v44 = vpop.f32.mrb[7].mxu1 }
 0x2a1   :  { %v685_v12 = vmax.f32 %v684_v43, 0.0 }
 0x2a3   :  { %v686_v45 = vpack.c.bf16 %v685_v12, %v685_v12 }
 0x2a5   :  { %1019 = vmatmul.mubr.msk.bf16.vlgmr.msra.gmra.mrb[16].mxu0 %vm633_vm4, %v686_v45 }
 0x378   :  { %v763_v48 = vpop.f32.mrb[16].mxu0 }
 0x379   :  { %v764_v49 = vadd.f32 %v891_v47, %v763_v48  ;;  %v1020_v50 = vpop.f32.mrb[17].mxu0 }
 0x37a   :  { %v766_v51 = vpop.f32.mrb[18].mxu0 }
 0x37b   :  { %v769_v52 = vmax.f32 %v764_v49, 0.0  ;;  %v1021_v53 = vpop.f32.mrb[19].mxu0 }
 0x37d   :  { %v771_v54 = vpack.c.bf16 %v769_v52, %v769_v52 }
 0x37f   :  { %v786_v55 = vsel %vm633_vm4, %v771_v54, 0 }
 0x380   :  { %1023 = vmatpush3.bf16.xpose.msra.mxu1 %v786_v55 }
 0x387   :  { %1025 = vmatmul.mubr.msk.bf16.vlgmr.msra.gmra.mrb[8].mxu1 %vm633_vm4, %v770_v56 }
 0x45a   :  { %v822_v59 = vpop.f32.mrb[8].mxu1 }
 0x45b   :  { %v823_v60 = vadd.f32 %v822_v59, %v781_v58  ;;  %v1026_v61 = vpop.f32.mrb[9].mxu1 }
 0x45c   :  { %v825_v62 = vpop.f32.mrb[10].mxu1 }
 0x45d   :  { %v1027_v63 = vpop.f32.mrb[11].mxu1  ;;  %829 = vst.msk [vmem:[#allocation3] sm:$0x1] %vm828_vm5, %v823_v60 }
 0x45e   :  { %1090 = shalt.err (!%p1087_p4)
}
 0x45f   :  { %s1091_s4 = scalar_lea.hbm %s1441_s17, 16 }
 0x460   :  { %p1092_p5 = scmp.ne.s32.totalorder %s1441_s17, %s1091_s4  ;;  %p1095_p6 = scmp.lt.u32.totalorder %s1091_s4, %s1441_s17 }
 0x462   :  { %p1097_p7 = pnand %p1095_p6, %p1092_p5 }
 0x464   :  { %1100 = shalt.err (!%p1097_p7)
}
 0x465   :  { %839 = dma.vmem_to_hbm [thread:$0]  %s837_s18, 16, %s1441_s17, [#allocation4]  }
 0x466   :  { %1101 = dma.done.wait [#allocation4], 16  }
 0x467   :  { %1102 = vsyncadd [#allocation4], 4294967280 }
 0x468   :  { %843 = vsyncpa [#allocation4], 1 }

</bundles_post_ra>
